<compile_context>
chip_gen: v7x
topology: tpu7x:2x2x1
jax: 0.10.0
libtpu: 0.0.40
codegen_flags: <defaults>
</compile_context>

<pallas_src>
import functools

import jax
import jax.numpy as jnp
from jax.experimental import pallas as pl
from jax.experimental.pallas import tpu as pltpu

_LANE = 128


def _classifier_kernel(x_ref, w_proj_ref, w_cls_ref, b_cls_ref, out_ref):
    fusion_dim = w_cls_ref.shape[0]

    # Single wide MXU push: all four projections (+ biases via the ones column
    # packed into x) at once; accumulate in f32.
    proj = jnp.dot(x_ref[...], w_proj_ref[...],
                   preferred_element_type=jnp.float32)            # (B, 4F) f32

    img_f     = proj[:, 0 * fusion_dim:1 * fusion_dim]
    ext_f     = proj[:, 1 * fusion_dim:2 * fusion_dim]
    txt_f     = proj[:, 2 * fusion_dim:3 * fusion_dim]
    ext_txt_f = proj[:, 3 * fusion_dim:4 * fusion_dim]

    def dist_sum(y):
        # Sum over batch of per-row L2 distance. The reference takes the mean,
        # but the 1/B factor cancels exactly in d_i / sum_j(d_j).
        d = jnp.sqrt(jnp.sum((img_f - y) ** 2, axis=-1, keepdims=True))  # (B,1)
        return jnp.sum(d, axis=0, keepdims=True)                          # (1,1)

    d_ext     = dist_sum(ext_f)
    d_txt     = dist_sum(txt_f)
    d_ext_txt = dist_sum(ext_txt_f)

    # One approx reciprocal (EUP) instead of three serial vector divides.
    inv_sum = pl.reciprocal(d_ext + d_txt + d_ext_txt, approx=True)
    w_ext     = d_ext * inv_sum
    w_txt     = d_txt * inv_sum
    w_ext_txt = d_ext_txt * inv_sum
    # Note: w_ext + w_txt + w_ext_txt == 1 up to fp rounding, so the img_f
    # coefficient is ~0. Kept as-is to match the reference module's semantics.
    c_img = 1.0 - (w_ext + w_txt + w_ext_txt)

    fusion = (img_f * c_img + ext_f * w_ext + txt_f * w_txt
              + ext_txt_f * w_ext_txt)

    # Lane-dense classifier matmul into the padded (B, 128) output tile.
    out_ref[...] = (jnp.dot(fusion.astype(w_cls_ref.dtype), w_cls_ref[...],
                            preferred_element_type=jnp.float32)
                    + b_cls_ref[...])


def init_params(key, img_dim, ext_dim, txt_dim, fusion_dim, num_classes=2):
    ks = jax.random.split(key, 10)
    s = 0.1
    return {
        "w_img": jax.random.normal(ks[0], (img_dim, fusion_dim), jnp.float32) * s,
        "b_img": jax.random.normal(ks[1], (1, fusion_dim), jnp.float32) * s,
        "w_ext": jax.random.normal(ks[2], (ext_dim, fusion_dim), jnp.float32) * s,
        "b_ext": jax.random.normal(ks[3], (1, fusion_dim), jnp.float32) * s,
        "w_txt": jax.random.normal(ks[4], (txt_dim, fusion_dim), jnp.float32) * s,
        "b_txt": jax.random.normal(ks[5], (1, fusion_dim), jnp.float32) * s,
        # ext_txt_fc weight split into the ext-part and txt-part of the concat
        "w_et_e": jax.random.normal(ks[6], (ext_dim, fusion_dim), jnp.float32) * s,
        "w_et_t": jax.random.normal(ks[7], (txt_dim, fusion_dim), jnp.float32) * s,
        "b_et": jax.random.normal(ks[8], (1, fusion_dim), jnp.float32) * s,
        "w_cls": jax.random.normal(ks[9], (fusion_dim, num_classes), jnp.float32) * s,
        "b_cls": jnp.zeros((1, num_classes), jnp.float32),
    }


@functools.partial(jax.jit, static_argnames=("compute_dtype",))
def custom_classifiered_forward(img_features, ext_features, txt_features,
                                params, *, compute_dtype=jnp.bfloat16):
    B = img_features.shape[0]
    img = img_features.reshape(B, -1).astype(jnp.float32)
    ext = ext_features.reshape(B, -1).astype(jnp.float32)   # .view(B, -1)
    txt = txt_features.reshape(B, -1).astype(jnp.float32)   # .view(B, -1)

    di, de, dt = img.shape[1], ext.shape[1], txt.shape[1]
    F = params["w_img"].shape[1]
    num_classes = params["w_cls"].shape[1]

    d_total = di + de + dt + 1                       # +1 ones column -> biases
    d_pad = -(-d_total // _LANE) * _LANE
    n_cls_pad = -(-num_classes // _LANE) * _LANE

    # Fused block-structured projection weight (d_pad, 4F); biases in the row
    # matched to the ones column of x.
    w_proj = jnp.zeros((d_pad, 4 * F), jnp.float32)
    w_proj = w_proj.at[0:di,                 0 * F:1 * F].set(params["w_img"])
    w_proj = w_proj.at[di:di + de,           1 * F:2 * F].set(params["w_ext"])
    w_proj = w_proj.at[di + de:di + de + dt, 2 * F:3 * F].set(params["w_txt"])
    w_proj = w_proj.at[di:di + de,           3 * F:4 * F].set(params["w_et_e"])
    w_proj = w_proj.at[di + de:di + de + dt, 3 * F:4 * F].set(params["w_et_t"])
    bias_row = jnp.concatenate(
        [params["b_img"], params["b_ext"], params["b_txt"], params["b_et"]],
        axis=-1).reshape(-1)                                           # (4F,)
    w_proj = w_proj.at[di + de + dt, :].set(bias_row)

    # Lane-dense padded classifier weight / bias (zeros past num_classes).
    w_cls = jnp.zeros((F, n_cls_pad), jnp.float32).at[:, :num_classes].set(
        params["w_cls"])
    b_cls = jnp.zeros((1, n_cls_pad), jnp.float32).at[:, :num_classes].set(
        params["b_cls"])

    # Packed activation [img | ext | txt | 1 | 0-pad].
    ones = jnp.ones((B, 1), jnp.float32)
    x = jnp.concatenate([img, ext, txt, ones], axis=-1)
    x_pad = jnp.zeros((B, d_pad), jnp.float32).at[:, :d_total].set(x)

    # MXU operands in the compute dtype (bf16 by default); f32 accumulate.
    x_pad = x_pad.astype(compute_dtype)
    w_proj = w_proj.astype(compute_dtype)
    w_cls = w_cls.astype(compute_dtype)

    itemsize = jnp.dtype(compute_dtype).itemsize
    cost = pl.CostEstimate(
        flops=int(2 * B * d_pad * 4 * F + 2 * B * F * n_cls_pad + 12 * B * F),
        transcendentals=int(3 * B + 1),
        bytes_accessed=int((x_pad.size + w_proj.size + w_cls.size) * itemsize
                           + (b_cls.size + B * n_cls_pad) * 4),
    )

    vmem = lambda: pl.BlockSpec(memory_space=pltpu.MemorySpace.VMEM)
    # TODO(synk): at realistic batch sizes, switch to a batch-tiled two-pass
    # grid (pass 1 accumulates the three distance sums over an "arbitrary"
    # batch axis; pass 2 applies the scalar weights + classifier with
    # dimension_semantics=("parallel",)) so v7x's 64 MiB VMEM / 2 TCs scale.
    out_padded = pl.pallas_call(
        _classifier_kernel,
        out_shape=jax.ShapeDtypeStruct((B, n_cls_pad), jnp.float32),
        in_specs=[vmem(), vmem(), vmem(), vmem()],
        out_specs=vmem(),
        cost_estimate=cost,
        compiler_params=pltpu.CompilerParams(vmem_limit_bytes=32 * 1024 * 1024),
    )(x_pad, w_proj, w_cls, b_cls)

    return out_padded[:, :num_classes]


def _reference_forward(img, ext_raw, txt_raw, params):
    B = img.shape[0]
    ext = ext_raw.reshape(B, -1)
    txt = txt_raw.reshape(B, -1)
    img_f = img @ params["w_img"] + params["b_img"]
    ext_f = ext @ params["w_ext"] + params["b_ext"]
    txt_f = txt @ params["w_txt"] + params["b_txt"]
    ext_txt_f = ext @ params["w_et_e"] + txt @ params["w_et_t"] + params["b_et"]

    def ed(x, y):
        return jnp.mean(jnp.sqrt(jnp.sum((x - y) ** 2, axis=-1)))

    d1, d2, d3 = ed(img_f, ext_f), ed(img_f, txt_f), ed(img_f, ext_txt_f)
    ds = d1 + d2 + d3
    w1, w2, w3 = d1 / ds, d2 / ds, d3 / ds
    fusion = (img_f * (1 - (w1 + w2 + w3)) + ext_f * w1 + txt_f * w2
              + ext_txt_f * w3)
    return fusion @ params["w_cls"] + params["b_cls"]


if __name__ == "__main__":
    key = jax.random.PRNGKey(0)
    k_img, k_ext, k_txt, k_par = jax.random.split(key, 4)

    # small shapes: batch=8, img_dim=16, ext raw (8,2,4)->8, txt raw (8,3,8)->24,
    # fusion_dim=32, num_classes=2
    B, IMG_D, FUSION_D, NUM_CLASSES = 8, 16, 32, 2
    ext_raw = jax.random.normal(k_ext, (B, 2, 4), jnp.float32)   # flattens to 8
    txt_raw = jax.random.normal(k_txt, (B, 3, 8), jnp.float32)   # flattens to 24
    img = jax.random.normal(k_img, (B, IMG_D), jnp.float32)

    EXT_D = ext_raw.shape[1] * ext_raw.shape[2]
    TXT_D = txt_raw.shape[1] * txt_raw.shape[2]
    params = init_params(k_par, IMG_D, EXT_D, TXT_D, FUSION_D, NUM_CLASSES)

    ref = _reference_forward(img, ext_raw, txt_raw, params)

    # f32 MXU-operand path: tight check (only approx-reciprocal deviates).
    out_f32 = custom_classifiered_forward(img, ext_raw, txt_raw, params,
                                          compute_dtype=jnp.float32)
    out_f32 = jax.block_until_ready(out_f32)
    assert out_f32.shape == (B, NUM_CLASSES)
    assert jnp.allclose(out_f32, ref, atol=1e-2, rtol=1e-2), (out_f32, ref)

    # bf16 MXU-operand path (default, the fast path on v6e/v7x): looser check.
    out_bf16 = custom_classifiered_forward(img, ext_raw, txt_raw, params)
    out_bf16 = jax.block_until_ready(out_bf16)
    assert out_bf16.shape == (B, NUM_CLASSES)
    assert jnp.allclose(out_bf16, ref, atol=7e-2, rtol=7e-2), (out_bf16, ref)

    print("KERNEL_OK")
</pallas_src>

<mosaic_0001>
module attributes {stable_mosaic.version = 11 : i64} {
  func.func @_classifier_kernel(%arg0: memref<8x128xf32, #tpu.memory_space<vmem>>, %arg1: memref<128x128xf32, #tpu.memory_space<vmem>>, %arg2: memref<32x128xf32, #tpu.memory_space<vmem>>, %arg3: memref<1x128xf32, #tpu.memory_space<vmem>>, %arg4: memref<8x128xf32, #tpu.memory_space<vmem>>) attributes {dimension_semantics = [], scalar_prefetch = 0 : i64, scratch_operands = 0 : i64, tpu.core_type = #tpu.core_type<tc>} {
    %c0 = arith.constant 0 : index
    %c0_0 = arith.constant 0 : index
    %0 = vector.load %arg0[%c0, %c0_0] : memref<8x128xf32, #tpu.memory_space<vmem>>, vector<8x128xf32>
    %c0_1 = arith.constant 0 : index
    %c0_2 = arith.constant 0 : index
    %1 = vector.load %arg1[%c0_1, %c0_2] : memref<128x128xf32, #tpu.memory_space<vmem>>, vector<128x128xf32>
    %cst = arith.constant dense<0.000000e+00> : vector<8x128xf32>
    %2 = tpu.matmul %0, %1, %cst {dimension_numbers = #tpu.dot_dimension_numbers<[1], [0], [0], [1], [0, 0, 1, 1], [], []>} : vector<8x128xf32>, vector<128x128xf32>, vector<8x128xf32> -> vector<8x128xf32>
    %3 = vector.extract_strided_slice %2 {offsets = [0, 0], sizes = [8, 32], strides = [1, 1]} : vector<8x128xf32> to vector<8x32xf32>
    %4 = vector.extract_strided_slice %2 {offsets = [0, 32], sizes = [8, 32], strides = [1, 1]} : vector<8x128xf32> to vector<8x32xf32>
    %5 = vector.extract_strided_slice %2 {offsets = [0, 64], sizes = [8, 32], strides = [1, 1]} : vector<8x128xf32> to vector<8x32xf32>
    %6 = vector.extract_strided_slice %2 {offsets = [0, 96], sizes = [8, 32], strides = [1, 1]} : vector<8x128xf32> to vector<8x32xf32>
    %7 = arith.subf %3, %4 : vector<8x32xf32>
    %8 = arith.mulf %7, %7 : vector<8x32xf32>
    %cst_3 = arith.constant dense<0.000000e+00> : vector<8xf32>
    %9 = vector.multi_reduction <add>, %8, %cst_3 [1] : vector<8x32xf32> to vector<8xf32>
    %10 = vector.shape_cast %9 : vector<8xf32> to vector<8x1xf32>
    %11 = math.sqrt %10 : vector<8x1xf32>
    %cst_4 = arith.constant dense<0.000000e+00> : vector<1xf32>
    %12 = vector.multi_reduction <add>, %11, %cst_4 [0] : vector<8x1xf32> to vector<1xf32>
    %13 = vector.shape_cast %12 : vector<1xf32> to vector<1x1xf32>
    %14 = arith.subf %3, %5 : vector<8x32xf32>
    %15 = arith.mulf %14, %14 : vector<8x32xf32>
    %cst_5 = arith.constant dense<0.000000e+00> : vector<8xf32>
    %16 = vector.multi_reduction <add>, %15, %cst_5 [1] : vector<8x32xf32> to vector<8xf32>
    %17 = vector.shape_cast %16 : vector<8xf32> to vector<8x1xf32>
    %18 = math.sqrt %17 : vector<8x1xf32>
    %cst_6 = arith.constant dense<0.000000e+00> : vector<1xf32>
    %19 = vector.multi_reduction <add>, %18, %cst_6 [0] : vector<8x1xf32> to vector<1xf32>
    %20 = vector.shape_cast %19 : vector<1xf32> to vector<1x1xf32>
    %21 = arith.subf %3, %6 : vector<8x32xf32>
    %22 = arith.mulf %21, %21 : vector<8x32xf32>
    %cst_7 = arith.constant dense<0.000000e+00> : vector<8xf32>
    %23 = vector.multi_reduction <add>, %22, %cst_7 [1] : vector<8x32xf32> to vector<8xf32>
    %24 = vector.shape_cast %23 : vector<8xf32> to vector<8x1xf32>
    %25 = math.sqrt %24 : vector<8x1xf32>
    %cst_8 = arith.constant dense<0.000000e+00> : vector<1xf32>
    %26 = vector.multi_reduction <add>, %25, %cst_8 [0] : vector<8x1xf32> to vector<1xf32>
    %27 = vector.shape_cast %26 : vector<1xf32> to vector<1x1xf32>
    %28 = arith.addf %13, %20 : vector<1x1xf32>
    %29 = arith.addf %28, %27 : vector<1x1xf32>
    %30 = tpu.reciprocal %29 {approx = true} : vector<1x1xf32> -> vector<1x1xf32>
    %31 = arith.mulf %13, %30 : vector<1x1xf32>
    %32 = arith.mulf %20, %30 : vector<1x1xf32>
    %33 = arith.mulf %27, %30 : vector<1x1xf32>
    %34 = arith.addf %31, %32 : vector<1x1xf32>
    %35 = arith.addf %34, %33 : vector<1x1xf32>
    %cst_9 = arith.constant 1.000000e+00 : f32
    %36 = vector.broadcast %cst_9 : f32 to vector<1x1xf32>
    %37 = arith.subf %36, %35 : vector<1x1xf32>
    %38 = vector.broadcast %37 : vector<1x1xf32> to vector<8x32xf32>
    %39 = arith.mulf %3, %38 : vector<8x32xf32>
    %40 = vector.broadcast %31 : vector<1x1xf32> to vector<8x32xf32>
    %41 = arith.mulf %4, %40 : vector<8x32xf32>
    %42 = arith.addf %39, %41 : vector<8x32xf32>
    %43 = vector.broadcast %32 : vector<1x1xf32> to vector<8x32xf32>
    %44 = arith.mulf %5, %43 : vector<8x32xf32>
    %45 = arith.addf %42, %44 : vector<8x32xf32>
    %46 = vector.broadcast %33 : vector<1x1xf32> to vector<8x32xf32>
    %47 = arith.mulf %6, %46 : vector<8x32xf32>
    %48 = arith.addf %45, %47 : vector<8x32xf32>
    %c0_10 = arith.constant 0 : index
    %c0_11 = arith.constant 0 : index
    %49 = vector.load %arg2[%c0_10, %c0_11] : memref<32x128xf32, #tpu.memory_space<vmem>>, vector<32x128xf32>
    %cst_12 = arith.constant dense<0.000000e+00> : vector<8x128xf32>
    %50 = tpu.matmul %48, %49, %cst_12 {dimension_numbers = #tpu.dot_dimension_numbers<[1], [0], [0], [1], [0, 0, 1, 1], [], []>} : vector<8x32xf32>, vector<32x128xf32>, vector<8x128xf32> -> vector<8x128xf32>
    %c0_13 = arith.constant 0 : index
    %c0_14 = arith.constant 0 : index
    %51 = vector.load %arg3[%c0_13, %c0_14] : memref<1x128xf32, #tpu.memory_space<vmem>>, vector<1x128xf32>
    %52 = vector.broadcast %51 : vector<1x128xf32> to vector<8x128xf32>
    %53 = arith.addf %50, %52 : vector<8x128xf32>
    %c0_15 = arith.constant 0 : index
    %c0_16 = arith.constant 0 : index
    %54 = vector.load %arg4[%c0_15, %c0_16] : memref<8x128xf32, #tpu.memory_space<vmem>>, vector<8x128xf32>
    tpu.vector_store %arg4[%c0_15, %c0_16], %53 {strides = array<i32>} : memref<8x128xf32, #tpu.memory_space<vmem>>, vector<8x128xf32>,
    return
  }
}

</mosaic_0001>

<bundles_post_ra>
// kernel: custom_classifiered_forward.1
= control target key start
LH: loop header
LB: loop body
LE: loop exit
PB: predicated region body
PF: predicated region fallthrough
CT: control target
= control target key end

     0   :  { %v400_v0 = vmov 0.0|0.0   ;;  %vm401_vm0 = vmmov 0   ;;  %v402_v4 = vmov 0.0   ;;  %s403_s23 = smov 32   ;;  %s404_s24 = smov 96   ;;  %vm110_vm1 = vcmask 261120   ;;  %s532_s1 = inlined_call_operand.vmem [shape: f32[128,128], index: 1, kind: input, shape index: {}]   ;;  %s533_s0 = inlined_call_operand.vmem [shape: f32[8,128], index: 0, kind: input, shape index: {}]   ;;  %s534_s2 = inlined_call_operand.vmem [shape: f32[32,128], index: 2, kind: input, shape index: {}]   ;;  %s535_s3 = inlined_call_operand.vmem [shape: f32[1,128], index: 3, kind: input, shape index: {}]   ;;  %s536_s4 = inlined_call_operand.vmem [shape: f32[8,128], index: 4, kind: output, shape index: {}]  }
   0x1   :  { %356 = vmatprep.subr.bf16.mxu0 %v400_v0  ;;  %v18_v1 = vld [vmem:[%s532_s1] sm:$0xff]  ;;  %v19_v2 = vld [vmem:[%s532_s1 + $0x8] sm:$0xff]  ;;  %v20_v3 = vld [vmem:[%s532_s1 + $0x10] sm:$0xff]  ;;  %342 = vmatprep.mubr.msk.f32.mxu0 %vm401_vm0, %v402_v4 }
   0x2   :  { %v357_v5 = vpack.c.bf16 %v19_v2, %v18_v1  ;;  %v21_v6 = vld [vmem:[%s532_s1 + $0x18] sm:$0xff]  ;;  %380 = vmatprep.subr.bf16.mxu1 %v400_v0  ;;  %353 = vmatprep.mubr.msk.f32.mxu1 %vm401_vm0, %v402_v4  ;;  %v22_v8 = vld [vmem:[%s532_s1 + $0x20] sm:$0xff]  ;;  %v23_v9 = vld [vmem:[%s532_s1 + $0x28] sm:$0xff] }
   0x3   :  { %v360_v7 = vpack.c.bf16 %v21_v6, %v20_v3  ;;  %v363_v10 = vpack.c.bf16 %v23_v9, %v22_v8  ;;  %v24_v11 = vld [vmem:[%s532_s1 + $0x30] sm:$0xff]  ;;  %v25_v12 = vld [vmem:[%s532_s1 + $0x38] sm:$0xff]  ;;  %v26_v14 = vld [vmem:[%s532_s1 + $0x40] sm:$0xff] }
   0x4   :  { %358 = vmatpush3.bf16.msra.mxu0 %v357_v5  ;;  %v366_v13 = vpack.c.bf16 %v25_v12, %v24_v11  ;;  %v27_v15 = vld [vmem:[%s532_s1 + $0x48] sm:$0xff]  ;;  %v28_v17 = vld [vmem:[%s532_s1 + $0x50] sm:$0xff]  ;;  %v29_v18 = vld [vmem:[%s532_s1 + $0x58] sm:$0xff] }
   0x5   :  { %359 = vmatprep.subr.bf16.mxu0 %v400_v0  ;;  %v369_v16 = vpack.c.bf16 %v27_v15, %v26_v14  ;;  %v372_v19 = vpack.c.bf16 %v29_v18, %v28_v17  ;;  %v30_v20 = vld [vmem:[%s532_s1 + $0x60] sm:$0xff]  ;;  %v31_v21 = vld [vmem:[%s532_s1 + $0x68] sm:$0xff]  ;;  %v32_v23 = vld [vmem:[%s532_s1 + $0x70] sm:$0xff] }
   0x6   :  { %v375_v22 = vpack.c.bf16 %v31_v21, %v30_v20  ;;  %v33_v24 = vld [vmem:[%s532_s1 + $0x78] sm:$0xff]  ;;  %v17_v26 = vld [vmem:[%s533_s0] sm:$0xff]  ;;  %s405_s1 = smov 64   ;;  %v198_v42 = vld [vmem:[%s534_s2 + $0x8] sm:$0xff] }
   0x7   :  { %v378_v25 = vpack.c.bf16 %v33_v24, %v32_v23  ;;  %v197_v41 = vld [vmem:[%s534_s2] sm:$0xff]  ;;  %v199_v18 = vld [vmem:[%s534_s2 + $0x10] sm:$0xff] }
   0x8   :  { %361 = vmatpush3.bf16.msra.mxu0 %v360_v7  ;;  %v381_v43 = vpack.c.bf16 %v198_v42, %v197_v41 }
   0x9   :  { %362 = vmatprep.subr.bf16.mxu0 %v400_v0 }
   0xa   :  { %382 = vmatpush3.bf16.msra.mxu1 %v381_v43 }
   0xb   :  { %383 = vmatprep.subr.bf16.mxu1 %v400_v0 }
   0xc   :  { %364 = vmatpush3.bf16.msra.mxu0 %v363_v10 }
   0xd   :  { %365 = vmatprep.subr.bf16.mxu0 %v400_v0 }
  0x10   :  { %367 = vmatpush3.bf16.msra.mxu0 %v366_v13 }
  0x11   :  { %368 = vmatprep.subr.bf16.mxu0 %v400_v0 }
  0x14   :  { %370 = vmatpush3.bf16.msra.mxu0 %v369_v16 }
  0x15   :  { %371 = vmatprep.subr.bf16.mxu0 %v400_v0 }
  0x18   :  { %373 = vmatpush3.bf16.msra.mxu0 %v372_v19  ;;  %v200_v19 = vld [vmem:[%s534_s2 + $0x18] sm:$0xff] }
  0x19   :  { %374 = vmatprep.subr.bf16.mxu0 %v400_v0  ;;  %v384_v20 = vpack.c.bf16 %v200_v19, %v199_v18 }
  0x1b   :  { %385 = vmatpush3.bf16.msra.mxu1 %v384_v20 }
  0x1c   :  { %376 = vmatpush3.bf16.msra.mxu0 %v375_v22 }
  0x1d   :  { %377 = vmatprep.subr.bf16.mxu0 %v400_v0 }
  0x20   :  { %379 = vmatpush3.bf16.msra.mxu0 %v378_v25 }
  0x23   :  { %343 = vmatmul.mubr.f32.vlgmr.msra.gmra.mrb[0].mxu0 %v17_v26 }
  0xf6   :  { %v491_v27 = vpop.f32.mrb[0].mxu0 }
  0xf7   :  { %148 = vrot.lane.b32.xlu1 %v491_v27, %s403_s23  ;;  %105 = vrot.lane.b32.xlu0 %v491_v27, %s404_s24  ;;  %v344_v28 = vpop.f32.mrb[1].mxu0 }
  0xfb   :  { %127 = vrot.lane.b32.xlu0 %v491_v27, %s405_s1 }
 0x169   :  { %v106_v29 = vpop.permute.xlu0 %105  ;;  %v149_v31 = vpop.permute.xlu1 %148 }
 0x16a   :  { %v108_v30 = vsub.f32 %v491_v27, %v106_v29  ;;  %v151_v34 = vsub.f32 %v491_v27, %v149_v31 }
 0x16c   :  { %v109_v32 = vmul.f32 %v108_v30, %v108_v30  ;;  %v152_v38 = vmul.f32 %v151_v34, %v151_v34 }
 0x16d   :  { %v128_v33 = vpop.permute.xlu0 %127 }
 0x16e   :  { %v130_v35 = vsub.f32 %v491_v27, %v128_v33  ;;  %v111_v36 = vsel %vm110_vm1, %v109_v32, 0.0  ;;  %v153_v40 = vsel %vm110_vm1, %v152_v38, 0.0 }
 0x16f   :  { %112 = vadd.xlane.f32.xlu1 %v111_v36 }
 0x170   :  { %v131_v37 = vmul.f32 %v130_v35, %v130_v35 }
 0x172   :  { %v132_v39 = vsel %vm110_vm1, %v131_v37, 0.0 }
 0x173   :  { %133 = vadd.xlane.f32.xlu0 %v132_v39  ;;  %v286_v39 = vld [vmem:[%s535_s3] ss:$0 sm:$0xff] }
 0x177   :  { %154 = vadd.xlane.f32.xlu0 %v153_v40 }
 0x1fc   :  { %v113_v44 = vpop.xlane.xlu1 %112 }
 0x1fd   :  { %392 = vrsqrt.f32 %v113_v44  ;;  %vm116_vm2 = vcmp.eq.f32.partialorder %v113_v44, inf  ;;  %v119_v49 = vand.u32 2147483648, %v113_v44  ;;  %vm118_vm3 = vcmp.eq.f32.partialorder %v113_v44, 0.0 }
 0x200   :  { %v134_v45 = vpop.xlane.xlu0 %133 }
 0x201   :  { %394 = vrsqrt.f32 %v134_v45  ;;  %vm137_vm4 = vcmp.eq.f32.partialorder %v134_v45, inf  ;;  %v140_v55 = vand.u32 2147483648, %v134_v45  ;;  %vm139_vm5 = vcmp.eq.f32.partialorder %v134_v45, 0.0 }
 0x204   :  { %v155_v46 = vpop.xlane.xlu0 %154 }
 0x205   :  { %396 = vrsqrt.f32 %v155_v46  ;;  %vm158_vm6 = vcmp.eq.f32.partialorder %v155_v46, inf  ;;  %v161_v63 = vand.u32 2147483648, %v155_v46  ;;  %vm160_vm7 = vcmp.eq.f32.partialorder %v155_v46, 0.0 }
 0x207   :  { %v393_v47 = vpop.eup %392 }
 0x208   :  { %v115_v48 = vmul.f32 %v393_v47, %v113_v44 }
 0x20a   :  { %v117_v50 = vsel %vm116_vm2, %v113_v44, %v115_v48 }
 0x20b   :  { %v395_v51 = vpop.eup %394  ;;  %v120_v52 = vsel %vm118_vm3, %v119_v49, %v117_v50 }
 0x20c   :  { %v121_v53 = vrot.slane %v120_v52, 4  ;;  %v136_v54 = vmul.f32 %v395_v51, %v134_v45 }
 0x20e   :  { %v122_v56 = vadd.f32 %v121_v53, %v120_v52  ;;  %v138_v57 = vsel %vm137_vm4, %v134_v45, %v136_v54 }
 0x20f   :  { %v397_v58 = vpop.eup %396  ;;  %v141_v59 = vsel %vm139_vm5, %v140_v55, %v138_v57 }
 0x210   :  { %v157_v60 = vmul.f32 %v397_v58, %v155_v46  ;;  %v123_v61 = vrot.slane %v122_v56, 2  ;;  %v142_v62 = vrot.slane %v141_v59, 4 }
 0x212   :  { %v159_v0 = vsel %vm158_vm6, %v155_v46, %v157_v60  ;;  %v143_v1 = vadd.f32 %v142_v62, %v141_v59  ;;  %v124_v4 = vadd.f32 %v123_v61, %v122_v56 }
 0x213   :  { %v162_v2 = vsel %vm160_vm7, %v161_v63, %v159_v0 }
 0x214   :  { %v163_v3 = vrot.slane %v162_v2, 4  ;;  %v144_v5 = vrot.slane %v143_v1, 2  ;;  %v125_v9 = vrot.slane %v124_v4, 1 }
 0x216   :  { %v164_v6 = vadd.f32 %v163_v3, %v162_v2  ;;  %v145_v7 = vadd.f32 %v144_v5, %v143_v1  ;;  %v126_v13 = vadd.f32 %v125_v9, %v124_v4 }
 0x218   :  { %v165_v8 = vrot.slane %v164_v6, 2  ;;  %v146_v10 = vrot.slane %v145_v7, 1 }
 0x21a   :  { %v147_v11 = vadd.f32 %v146_v10, %v145_v7  ;;  %v166_v12 = vadd.f32 %v165_v8, %v164_v6 }
 0x21c   :  { %v167_v14 = vrot.slane %v166_v12, 1  ;;  %v169_v16 = vadd.f32 %v147_v11, %v126_v13 }
 0x21e   :  { %v168_v15 = vadd.f32 %v167_v14, %v166_v12 }
 0x220   :  { %v170_v17 = vadd.f32 %v169_v16, %v168_v15 }
 0x222   :  { %398 = vrcp.f32 %v170_v17 }
 0x22c   :  { %v399_v21 = vpop.eup %398 }
 0x22d   :  { %v173_v22 = vmul.f32 %v399_v21, %v147_v11  ;;  %v172_v23 = vmul.f32 %v399_v21, %v126_v13  ;;  %v174_v26 = vmul.f32 %v399_v21, %v168_v15 }
 0x22f   :  { %v185_v24 = vmul.f32 %v173_v22, %v491_v27  ;;  %v179_v25 = vmul.f32 %v172_v23, %v491_v27  ;;  %v175_v28 = vadd.f32 %v173_v22, %v172_v23  ;;  %v191_v30 = vmul.f32 %v174_v26, %v491_v27 }
 0x231   :  { %187 = vrot.lane.b32.xlu0 %v185_v24, %s405_s1  ;;  %181 = vrot.lane.b32.xlu1 %v179_v25, %s404_s24  ;;  %v176_v29 = vadd.f32 %v175_v28, %v174_v26 }
 0x233   :  { %v177_v31 = vsub.f32 1.0, %v176_v29 }
 0x235   :  { %193 = vrot.lane.b32.xlu1 %v191_v30, %s403_s23  ;;  %v178_v32 = vmul.f32 %v177_v31, %v491_v27 }
 0x2a3   :  { %v182_v33 = vpop.permute.xlu1 %181  ;;  %v188_v35 = vpop.permute.xlu0 %187 }
 0x2a4   :  { %v184_v34 = vadd.f32 %v182_v33, %v178_v32 }
 0x2a6   :  { %v190_v36 = vadd.f32 %v188_v35, %v184_v34 }
 0x2a7   :  { %v194_v37 = vpop.permute.xlu1 %193 }
 0x2a8   :  { %v196_v38 = vadd.f32 %v194_v37, %v190_v36 }
 0x2aa   :  { %354 = vmatmul.mubr.msk.f32.vlgmr.msra.gmra.mrb[0].mxu1 %vm110_vm1, %v196_v38 }
 0x37d   :  { %v277_v40 = vpop.f32.mrb[0].mxu1 }
 0x37e   :  { %v278_v41 = vadd.f32 %v286_v39, %v277_v40  ;;  %v355_v42 = vpop.f32.mrb[1].mxu1 }
 0x380   :  { %281 = vst [vmem:[%s536_s4] sm:$0xff] %v278_v41 }

</bundles_post_ra>
